<compile_context>
chip_gen: v6e
topology: v6e:2x2x1
jax: 0.10.0
libtpu: 0.0.40
codegen_flags: <defaults>
</compile_context>

<pallas_src>
import functools
import numpy as np

import jax
import jax.numpy as jnp
from jax import lax
from jax.experimental import pallas as pl
from jax.experimental.pallas import tpu as pltpu


def transformer_block_kernel(x_ref, wqkv_ref, wo_ref, win_ref, bin_ref,
                             wout_ref, bout_ref, o_ref, z_scratch,
                             *, batch, seq, num_heads, d_head, attn_coeff,
                             act_type):
    f32 = jnp.float32
    x = x_ref[...]                                   # (B*P, D)
    HD = num_heads * d_head
    inv_sqrt_dh = 1.0 / float(np.sqrt(d_head))
    dn_qkT = (((1,), (1,)), ((), ()))                # contract last dims (q · kᵀ)

    # Fused QKV projection for ALL batch rows at once: one MXU matmul,
    # M = B*P, N = 3*H*d_head.
    qkv = jnp.dot(x, wqkv_ref[...], preferred_element_type=f32)   # (B*P, 3*HD)

    # Attention: tiny (P,P) score / AV matmuls per (batch, head); each head's z
    # goes into its lane slice of the (B*P, HD) scratch so the output
    # projection collapses to ONE matmul after the loop.
    for b in range(batch):
        r0 = b * seq
        for i in range(num_heads):
            c0 = i * d_head
            q = qkv[r0:r0 + seq, c0:c0 + d_head]                       # (P, dh)
            k = qkv[r0:r0 + seq, HD + c0:HD + c0 + d_head]             # (P, dh)
            v = qkv[r0:r0 + seq, 2 * HD + c0:2 * HD + c0 + d_head]     # (P, dh)

            # scores[q, p] = sum_h q[q,h] * k[p,h]
            s = lax.dot_general(q, k, dn_qkT,
                                preferred_element_type=f32) * inv_sqrt_dh
            # Causal mask intentionally omitted (reference never applies it).
            s = s - jnp.max(s, axis=-1, keepdims=True)
            e = jnp.exp(s)
            denom = jnp.sum(e, axis=-1, keepdims=True)
            # EUP approximate reciprocal + one Newton step (~f32 accuracy),
            # keeps the serial divide off the VALU.
            inv = pl.reciprocal(denom, approx=True)
            inv = inv * (2.0 - denom * inv)
            a = (e * inv) * attn_coeff + (1.0 - attn_coeff)

            z_scratch[r0:r0 + seq, c0:c0 + d_head] = jnp.dot(
                a, v, preferred_element_type=f32)                      # (P, dh)

    # Output projection: single (B*P, HD) x (HD, D) matmul (W_O pre-transposed).
    attn_out = jnp.dot(z_scratch[...], wo_ref[...],
                       preferred_element_type=f32)                     # (B*P, D)
    x1 = x + attn_out                                                  # residual 1

    # MLP (weights pre-transposed: W_in as (D, d_mlp), W_out as (d_mlp, D)).
    h = jnp.dot(x1, win_ref[...], preferred_element_type=f32) + bin_ref[...]
    if act_type == 'relu':
        h = jnp.maximum(h, 0.0)
    elif act_type == 'gelu':
        h = 0.5 * h * (1.0 + lax.erf(h * (1.0 / float(np.sqrt(2.0)))))
    elif act_type == 'tanh':
        h = jnp.tanh(h)
    mlp_out = jnp.dot(h, wout_ref[...], preferred_element_type=f32) + bout_ref[...]

    o_ref[...] = x1 + mlp_out                                          # residual 2


def pack_params(params):
    """One-time weight repack so every in-kernel matmul is a plain (M,K)x(K,N)
    contraction.  Call ONCE at setup — NOT inside the per-call jitted forward
    (these transposes/concats are real HLO ops that would otherwise round-trip
    the full weight set through HBM on every invocation)."""
    wk, wq, wv, wo, win, b_in, wout, b_out = params
    num_heads, d_head, d_model = wq.shape
    HD = num_heads * d_head
    d_mlp = win.shape[0]

    wq_t = wq.reshape(HD, d_model).T               # (D, HD), column = i*d_head + h
    wk_t = wk.reshape(HD, d_model).T
    wv_t = wv.reshape(HD, d_model).T
    wqkv_t = jnp.concatenate([wq_t, wk_t, wv_t], axis=1)   # (D, 3*HD)
    wo_t = wo.T                                    # (HD, D)
    win_t = win.T                                  # (D, d_mlp)
    wout_t = wout.T                                # (d_mlp, D)
    b_in2 = b_in.reshape(1, d_mlp)
    b_out2 = b_out.reshape(1, d_model)
    packed = (wqkv_t, wo_t, win_t, b_in2, wout_t, b_out2)
    return jax.tree.map(jax.block_until_ready, packed)


@functools.partial(jax.jit,
                   static_argnames=("num_heads", "d_head", "attn_coeff", "act_type"))
def transformer_block(x, packed_params, *, num_heads, d_head, attn_coeff, act_type):
    B, P, D = x.shape
    wqkv_t, wo_t, win_t, b_in2, wout_t, b_out2 = packed_params
    HD = num_heads * d_head

    # Merge batch into the row (sublane) axis: contiguous reshape, effectively
    # free under XLA, and it gives every in-kernel matmul M = B*P rows plus one
    # tall output store instead of B masked ones.
    x2d = x.reshape(B * P, D)

    kernel = functools.partial(
        transformer_block_kernel,
        batch=B, seq=P, num_heads=num_heads, d_head=d_head,
        attn_coeff=attn_coeff, act_type=act_type)

    def full2d(arr):
        # Whole-array block, constant index map (weights resident in VMEM).
        assert arr.ndim == 2
        return pl.BlockSpec(arr.shape, lambda g: (0, 0))

    out2d = pl.pallas_call(
        kernel,
        out_shape=jax.ShapeDtypeStruct((B * P, D), jnp.float32),
        grid_spec=pltpu.PrefetchScalarGridSpec(
            num_scalar_prefetch=0,
            # Single step: the whole (tiny) forward is one kernel invocation.
            # TODO(synk): for production-size batches, add a batch-block grid
            # axis here ("parallel") with (B_blk*P, D) x-blocks per step.
            grid=(1,),
            in_specs=[
                pl.BlockSpec((B * P, D), lambda g: (0, 0)),   # x (flattened)
                full2d(wqkv_t),                               # fused W_QKV (D, 3*HD)
                full2d(wo_t),                                 # W_O^T (HD, D)
                full2d(win_t),                                # W_in^T (D, d_mlp)
                full2d(b_in2),                                # b_in (1, d_mlp)
                full2d(wout_t),                               # W_out^T (d_mlp, D)
                full2d(b_out2),                               # b_out (1, D)
            ],
            out_specs=pl.BlockSpec((B * P, D), lambda g: (0, 0)),
            scratch_shapes=[pltpu.VMEM((B * P, HD), jnp.float32)],  # z_all
        ),
        compiler_params=pltpu.CompilerParams(
            dimension_semantics=("arbitrary",),     # one step; no core split
            vmem_limit_bytes=16 * 1024 * 1024,      # tiny footprint, safe on all gens
        ),
    )(x2d, wqkv_t, wo_t, win_t, b_in2, wout_t, b_out2)

    return out2d.reshape(B, P, D)


def transformer_block_ref(x, params, *, attn_coeff, act_type, d_head):
    """Pure-JAX reference matching the PyTorch forward exactly."""
    wk, wq, wv, wo, win, b_in, wout, b_out = params
    k = jnp.einsum('ihd,bpd->biph', wk, x)
    q = jnp.einsum('ihd,bpd->biph', wq, x)
    v = jnp.einsum('ihd,bpd->biph', wv, x)
    scores = jnp.einsum('biph,biqh->biqp', k, q) / np.sqrt(d_head)
    p_attn = jax.nn.softmax(scores, axis=-1)
    attn = p_attn * attn_coeff + (1.0 - attn_coeff)
    z = jnp.einsum('biph,biqp->biqh', v, attn)
    B, H, P, Dh = z.shape
    z_flat = jnp.transpose(z, (0, 2, 1, 3)).reshape(B, P, H * Dh)
    attn_out = jnp.einsum('df,bqf->bqd', wo, z_flat)
    x1 = x + attn_out
    h = jnp.einsum('md,bpd->bpm', win, x1) + b_in
    if act_type == 'relu':
        h = jnp.maximum(h, 0.0)
    elif act_type == 'gelu':
        h = 0.5 * h * (1.0 + lax.erf(h / np.sqrt(2.0)))
    elif act_type == 'tanh':
        h = jnp.tanh(h)
    mlp_out = jnp.einsum('dm,bpm->bpd', wout, h) + b_out
    return x1 + mlp_out


if __name__ == "__main__":
    # Small but module-consistent hyperparameters.
    B, P = 2, 8              # batch, n_ctx (sequence length)
    d_model, num_heads, d_head = 32, 4, 8
    d_mlp = d_model * 4
    act_type = 'relu'
    attn_coeff = 1.0

    key = jax.random.PRNGKey(0)
    ks = jax.random.split(key, 8)
    wk = jax.random.normal(ks[0], (num_heads, d_head, d_model), jnp.float32) / np.sqrt(d_model)
    wq = jax.random.normal(ks[1], (num_heads, d_head, d_model), jnp.float32) / np.sqrt(d_model)
    wv = jax.random.normal(ks[2], (num_heads, d_head, d_model), jnp.float32) / np.sqrt(d_model)
    wo = jax.random.normal(ks[3], (d_model, num_heads * d_head), jnp.float32) / np.sqrt(d_model)
    win = jax.random.normal(ks[4], (d_mlp, d_model), jnp.float32) / np.sqrt(d_mlp)
    b_in = jnp.zeros((d_mlp,), jnp.float32)
    wout = jax.random.normal(ks[5], (d_model, d_mlp), jnp.float32) / np.sqrt(d_model)
    b_out = jnp.zeros((d_model,), jnp.float32)
    params = (wk, wq, wv, wo, win, b_in, wout, b_out)

    x = jax.random.normal(ks[6], (B, P, d_model), jnp.float32)

    # One-time repack (outside the per-call jitted forward).
    packed = pack_params(params)

    out = transformer_block(x, packed, num_heads=num_heads, d_head=d_head,
                            attn_coeff=attn_coeff, act_type=act_type)
    out = jax.block_until_ready(out)

    ref = transformer_block_ref(x, params, attn_coeff=attn_coeff,
                                act_type=act_type, d_head=d_head)
    np.testing.assert_allclose(np.asarray(out), np.asarray(ref),
                               rtol=1e-5, atol=1e-5)

    print("KERNEL_OK")
</pallas_src>

<mosaic_0001>
module attributes {stable_mosaic.version = 11 : i64} {
  func.func @transformer_block_kernel(%arg0: i32, %arg1: memref<16x32xf32, #tpu.memory_space<vmem>>, %arg2: memref<32x96xf32, #tpu.memory_space<vmem>>, %arg3: memref<32x32xf32, #tpu.memory_space<vmem>>, %arg4: memref<32x128xf32, #tpu.memory_space<vmem>>, %arg5: memref<1x128xf32, #tpu.memory_space<vmem>>, %arg6: memref<128x32xf32, #tpu.memory_space<vmem>>, %arg7: memref<1x32xf32, #tpu.memory_space<vmem>>, %arg8: memref<16x32xf32, #tpu.memory_space<vmem>>, %arg9: memref<16x32xf32, #tpu.memory_space<vmem>>) attributes {dimension_semantics = [#tpu.dimension_semantics<arbitrary>], iteration_bounds = array<i64: 1>, scalar_prefetch = 0 : i64, scratch_operands = 1 : i64, tpu.core_type = #tpu.core_type<tc>, window_params = [{pipeline_mode = #tpu.pipeline_mode<synchronous>, transform_indices = @transform_0, window_bounds = array<i64: 16, 32>}, {pipeline_mode = #tpu.pipeline_mode<synchronous>, transform_indices = @transform_1, window_bounds = array<i64: 32, 96>}, {pipeline_mode = #tpu.pipeline_mode<synchronous>, transform_indices = @transform_2, window_bounds = array<i64: 32, 32>}, {pipeline_mode = #tpu.pipeline_mode<synchronous>, transform_indices = @transform_3, window_bounds = array<i64: 32, 128>}, {pipeline_mode = #tpu.pipeline_mode<synchronous>, transform_indices = @transform_4, window_bounds = array<i64: 1, 128>}, {pipeline_mode = #tpu.pipeline_mode<synchronous>, transform_indices = @transform_5, window_bounds = array<i64: 128, 32>}, {pipeline_mode = #tpu.pipeline_mode<synchronous>, transform_indices = @transform_6, window_bounds = array<i64: 1, 32>}, {pipeline_mode = #tpu.pipeline_mode<synchronous>, transform_indices = @transform_7, window_bounds = array<i64: 16, 32>}]} {
    %c0 = arith.constant 0 : index
    %c0_0 = arith.constant 0 : index
    %0 = vector.load %arg1[%c0, %c0_0] : memref<16x32xf32, #tpu.memory_space<vmem>>, vector<16x32xf32>
    %c0_1 = arith.constant 0 : index
    %c0_2 = arith.constant 0 : index
    %1 = vector.load %arg2[%c0_1, %c0_2] : memref<32x96xf32, #tpu.memory_space<vmem>>, vector<32x96xf32>
    %cst = arith.constant dense<0.000000e+00> : vector<16x96xf32>
    %2 = tpu.matmul %0, %1, %cst {dimension_numbers = #tpu.dot_dimension_numbers<[1], [0], [0], [1], [0, 0, 1, 1], [], []>} : vector<16x32xf32>, vector<32x96xf32>, vector<16x96xf32> -> vector<16x96xf32>
    %3 = vector.extract_strided_slice %2 {offsets = [0, 0], sizes = [8, 8], strides = [1, 1]} : vector<16x96xf32> to vector<8x8xf32>
    %4 = vector.extract_strided_slice %2 {offsets = [0, 32], sizes = [8, 8], strides = [1, 1]} : vector<16x96xf32> to vector<8x8xf32>
    %5 = vector.extract_strided_slice %2 {offsets = [0, 64], sizes = [8, 8], strides = [1, 1]} : vector<16x96xf32> to vector<8x8xf32>
    %cst_3 = arith.constant dense<0.000000e+00> : vector<8x8xf32>
    %6 = tpu.matmul %3, %4, %cst_3 {dimension_numbers = #tpu.dot_dimension_numbers<[1], [1], [0], [0], [0, 0, 1, 0], [], []>} : vector<8x8xf32>, vector<8x8xf32>, vector<8x8xf32> -> vector<8x8xf32>
    %cst_4 = arith.constant 0.353553385 : f32
    %7 = vector.broadcast %cst_4 : f32 to vector<8x8xf32>
    %8 = arith.mulf %6, %7 : vector<8x8xf32>
    %cst_5 = arith.constant dense<0xFF800000> : vector<8xf32>
    %9 = vector.multi_reduction <maximumf>, %8, %cst_5 [1] : vector<8x8xf32> to vector<8xf32>
    %10 = vector.shape_cast %9 : vector<8xf32> to vector<8x1xf32>
    %11 = vector.broadcast %10 : vector<8x1xf32> to vector<8x8xf32>
    %12 = arith.subf %8, %11 : vector<8x8xf32>
    %13 = math.exp %12 : vector<8x8xf32>
    %cst_6 = arith.constant dense<0.000000e+00> : vector<8xf32>
    %14 = vector.multi_reduction <add>, %13, %cst_6 [1] : vector<8x8xf32> to vector<8xf32>
    %15 = vector.shape_cast %14 : vector<8xf32> to vector<8x1xf32>
    %16 = tpu.reciprocal %15 {approx = true} : vector<8x1xf32> -> vector<8x1xf32>
    %17 = arith.mulf %15, %16 : vector<8x1xf32>
    %cst_7 = arith.constant 2.000000e+00 : f32
    %18 = vector.broadcast %cst_7 : f32 to vector<8x1xf32>
    %19 = arith.subf %18, %17 : vector<8x1xf32>
    %20 = arith.mulf %16, %19 : vector<8x1xf32>
    %21 = vector.broadcast %20 : vector<8x1xf32> to vector<8x8xf32>
    %22 = arith.mulf %13, %21 : vector<8x8xf32>
    %cst_8 = arith.constant 1.000000e+00 : f32
    %23 = vector.broadcast %cst_8 : f32 to vector<8x8xf32>
    %24 = arith.mulf %22, %23 : vector<8x8xf32>
    %cst_9 = arith.constant 0.000000e+00 : f32
    %25 = vector.broadcast %cst_9 : f32 to vector<8x8xf32>
    %26 = arith.addf %24, %25 : vector<8x8xf32>
    %cst_10 = arith.constant dense<0.000000e+00> : vector<8x8xf32>
    %27 = tpu.matmul %26, %5, %cst_10 {dimension_numbers = #tpu.dot_dimension_numbers<[1], [0], [0], [1], [0, 0, 1, 1], [], []>} : vector<8x8xf32>, vector<8x8xf32>, vector<8x8xf32> -> vector<8x8xf32>
    %c0_11 = arith.constant 0 : index
    %c0_12 = arith.constant 0 : index
    %28 = vector.load %arg9[%c0_11, %c0_12] : memref<16x32xf32, #tpu.memory_space<vmem>>, vector<8x8xf32>
    tpu.vector_store %arg9[%c0_11, %c0_12], %27 {strides = array<i32>} : memref<16x32xf32, #tpu.memory_space<vmem>>, vector<8x8xf32>,
    %29 = vector.extract_strided_slice %2 {offsets = [0, 8], sizes = [8, 8], strides = [1, 1]} : vector<16x96xf32> to vector<8x8xf32>
    %30 = vector.extract_strided_slice %2 {offsets = [0, 40], sizes = [8, 8], strides = [1, 1]} : vector<16x96xf32> to vector<8x8xf32>
    %31 = vector.extract_strided_slice %2 {offsets = [0, 72], sizes = [8, 8], strides = [1, 1]} : vector<16x96xf32> to vector<8x8xf32>
    %cst_13 = arith.constant dense<0.000000e+00> : vector<8x8xf32>
    %32 = tpu.matmul %29, %30, %cst_13 {dimension_numbers = #tpu.dot_dimension_numbers<[1], [1], [0], [0], [0, 0, 1, 0], [], []>} : vector<8x8xf32>, vector<8x8xf32>, vector<8x8xf32> -> vector<8x8xf32>
    %cst_14 = arith.constant 0.353553385 : f32
    %33 = vector.broadcast %cst_14 : f32 to vector<8x8xf32>
    %34 = arith.mulf %32, %33 : vector<8x8xf32>
    %cst_15 = arith.constant dense<0xFF800000> : vector<8xf32>
    %35 = vector.multi_reduction <maximumf>, %34, %cst_15 [1] : vector<8x8xf32> to vector<8xf32>
    %36 = vector.shape_cast %35 : vector<8xf32> to vector<8x1xf32>
    %37 = vector.broadcast %36 : vector<8x1xf32> to vector<8x8xf32>
    %38 = arith.subf %34, %37 : vector<8x8xf32>
    %39 = math.exp %38 : vector<8x8xf32>
    %cst_16 = arith.constant dense<0.000000e+00> : vector<8xf32>
    %40 = vector.multi_reduction <add>, %39, %cst_16 [1] : vector<8x8xf32> to vector<8xf32>
    %41 = vector.shape_cast %40 : vector<8xf32> to vector<8x1xf32>
    %42 = tpu.reciprocal %41 {approx = true} : vector<8x1xf32> -> vector<8x1xf32>
    %43 = arith.mulf %41, %42 : vector<8x1xf32>
    %cst_17 = arith.constant 2.000000e+00 : f32
    %44 = vector.broadcast %cst_17 : f32 to vector<8x1xf32>
    %45 = arith.subf %44, %43 : vector<8x1xf32>
    %46 = arith.mulf %42, %45 : vector<8x1xf32>
    %47 = vector.broadcast %46 : vector<8x1xf32> to vector<8x8xf32>
    %48 = arith.mulf %39, %47 : vector<8x8xf32>
    %cst_18 = arith.constant 1.000000e+00 : f32
    %49 = vector.broadcast %cst_18 : f32 to vector<8x8xf32>
    %50 = arith.mulf %48, %49 : vector<8x8xf32>
    %cst_19 = arith.constant 0.000000e+00 : f32
    %51 = vector.broadcast %cst_19 : f32 to vector<8x8xf32>
    %52 = arith.addf %50, %51 : vector<8x8xf32>
    %cst_20 = arith.constant dense<0.000000e+00> : vector<8x8xf32>
    %53 = tpu.matmul %52, %31, %cst_20 {dimension_numbers = #tpu.dot_dimension_numbers<[1], [0], [0], [1], [0, 0, 1, 1], [], []>} : vector<8x8xf32>, vector<8x8xf32>, vector<8x8xf32> -> vector<8x8xf32>
    %c0_21 = arith.constant 0 : index
    %c8 = arith.constant 8 : index
    %54 = vector.load %arg9[%c0_21, %c8] : memref<16x32xf32, #tpu.memory_space<vmem>>, vector<8x8xf32>
    tpu.vector_store %arg9[%c0_21, %c8], %53 {strides = array<i32>} : memref<16x32xf32, #tpu.memory_space<vmem>>, vector<8x8xf32>,
    %55 = vector.extract_strided_slice %2 {offsets = [0, 16], sizes = [8, 8], strides = [1, 1]} : vector<16x96xf32> to vector<8x8xf32>
    %56 = vector.extract_strided_slice %2 {offsets = [0, 48], sizes = [8, 8], strides = [1, 1]} : vector<16x96xf32> to vector<8x8xf32>
    %57 = vector.extract_strided_slice %2 {offsets = [0, 80], sizes = [8, 8], strides = [1, 1]} : vector<16x96xf32> to vector<8x8xf32>
    %cst_22 = arith.constant dense<0.000000e+00> : vector<8x8xf32>
    %58 = tpu.matmul %55, %56, %cst_22 {dimension_numbers = #tpu.dot_dimension_numbers<[1], [1], [0], [0], [0, 0, 1, 0], [], []>} : vector<8x8xf32>, vector<8x8xf32>, vector<8x8xf32> -> vector<8x8xf32>
    %cst_23 = arith.constant 0.353553385 : f32
    %59 = vector.broadcast %cst_23 : f32 to vector<8x8xf32>
    %60 = arith.mulf %58, %59 : vector<8x8xf32>
    %cst_24 = arith.constant dense<0xFF800000> : vector<8xf32>
    %61 = vector.multi_reduction <maximumf>, %60, %cst_24 [1] : vector<8x8xf32> to vector<8xf32>
    %62 = vector.shape_cast %61 : vector<8xf32> to vector<8x1xf32>
    %63 = vector.broadcast %62 : vector<8x1xf32> to vector<8x8xf32>
    %64 = arith.subf %60, %63 : vector<8x8xf32>
    %65 = math.exp %64 : vector<8x8xf32>
    %cst_25 = arith.constant dense<0.000000e+00> : vector<8xf32>
    %66 = vector.multi_reduction <add>, %65, %cst_25 [1] : vector<8x8xf32> to vector<8xf32>
    %67 = vector.shape_cast %66 : vector<8xf32> to vector<8x1xf32>
    %68 = tpu.reciprocal %67 {approx = true} : vector<8x1xf32> -> vector<8x1xf32>
    %69 = arith.mulf %67, %68 : vector<8x1xf32>
    %cst_26 = arith.constant 2.000000e+00 : f32
    %70 = vector.broadcast %cst_26 : f32 to vector<8x1xf32>
    %71 = arith.subf %70, %69 : vector<8x1xf32>
    %72 = arith.mulf %68, %71 : vector<8x1xf32>
    %73 = vector.broadcast %72 : vector<8x1xf32> to vector<8x8xf32>
    %74 = arith.mulf %65, %73 : vector<8x8xf32>
    %cst_27 = arith.constant 1.000000e+00 : f32
    %75 = vector.broadcast %cst_27 : f32 to vector<8x8xf32>
    %76 = arith.mulf %74, %75 : vector<8x8xf32>
    %cst_28 = arith.constant 0.000000e+00 : f32
    %77 = vector.broadcast %cst_28 : f32 to vector<8x8xf32>
    %78 = arith.addf %76, %77 : vector<8x8xf32>
    %cst_29 = arith.constant dense<0.000000e+00> : vector<8x8xf32>
    %79 = tpu.matmul %78, %57, %cst_29 {dimension_numbers = #tpu.dot_dimension_numbers<[1], [0], [0], [1], [0, 0, 1, 1], [], []>} : vector<8x8xf32>, vector<8x8xf32>, vector<8x8xf32> -> vector<8x8xf32>
    %c0_30 = arith.constant 0 : index
    %c16 = arith.constant 16 : index
    %80 = vector.load %arg9[%c0_30, %c16] : memref<16x32xf32, #tpu.memory_space<vmem>>, vector<8x8xf32>
    tpu.vector_store %arg9[%c0_30, %c16], %79 {strides = array<i32>} : memref<16x32xf32, #tpu.memory_space<vmem>>, vector<8x8xf32>,
    %81 = vector.extract_strided_slice %2 {offsets = [0, 24], sizes = [8, 8], strides = [1, 1]} : vector<16x96xf32> to vector<8x8xf32>
    %82 = vector.extract_strided_slice %2 {offsets = [0, 56], sizes = [8, 8], strides = [1, 1]} : vector<16x96xf32> to vector<8x8xf32>
    %83 = vector.extract_strided_slice %2 {offsets = [0, 88], sizes = [8, 8], strides = [1, 1]} : vector<16x96xf32> to vector<8x8xf32>
    %cst_31 = arith.constant dense<0.000000e+00> : vector<8x8xf32>
    %84 = tpu.matmul %81, %82, %cst_31 {dimension_numbers = #tpu.dot_dimension_numbers<[1], [1], [0], [0], [0, 0, 1, 0], [], []>} : vector<8x8xf32>, vector<8x8xf32>, vector<8x8xf32> -> vector<8x8xf32>
    %cst_32 = arith.constant 0.353553385 : f32
    %85 = vector.broadcast %cst_32 : f32 to vector<8x8xf32>
    %86 = arith.mulf %84, %85 : vector<8x8xf32>
    %cst_33 = arith.constant dense<0xFF800000> : vector<8xf32>
    %87 = vector.multi_reduction <maximumf>, %86, %cst_33 [1] : vector<8x8xf32> to vector<8xf32>
    %88 = vector.shape_cast %87 : vector<8xf32> to vector<8x1xf32>
    %89 = vector.broadcast %88 : vector<8x1xf32> to vector<8x8xf32>
    %90 = arith.subf %86, %89 : vector<8x8xf32>
    %91 = math.exp %90 : vector<8x8xf32>
    %cst_34 = arith.constant dense<0.000000e+00> : vector<8xf32>
    %92 = vector.multi_reduction <add>, %91, %cst_34 [1] : vector<8x8xf32> to vector<8xf32>
    %93 = vector.shape_cast %92 : vector<8xf32> to vector<8x1xf32>
    %94 = tpu.reciprocal %93 {approx = true} : vector<8x1xf32> -> vector<8x1xf32>
    %95 = arith.mulf %93, %94 : vector<8x1xf32>
    %cst_35 = arith.constant 2.000000e+00 : f32
    %96 = vector.broadcast %cst_35 : f32 to vector<8x1xf32>
    %97 = arith.subf %96, %95 : vector<8x1xf32>
    %98 = arith.mulf %94, %97 : vector<8x1xf32>
    %99 = vector.broadcast %98 : vector<8x1xf32> to vector<8x8xf32>
    %100 = arith.mulf %91, %99 : vector<8x8xf32>
    %cst_36 = arith.constant 1.000000e+00 : f32
    %101 = vector.broadcast %cst_36 : f32 to vector<8x8xf32>
    %102 = arith.mulf %100, %101 : vector<8x8xf32>
    %cst_37 = arith.constant 0.000000e+00 : f32
    %103 = vector.broadcast %cst_37 : f32 to vector<8x8xf32>
    %104 = arith.addf %102, %103 : vector<8x8xf32>
    %cst_38 = arith.constant dense<0.000000e+00> : vector<8x8xf32>
    %105 = tpu.matmul %104, %83, %cst_38 {dimension_numbers = #tpu.dot_dimension_numbers<[1], [0], [0], [1], [0, 0, 1, 1], [], []>} : vector<8x8xf32>, vector<8x8xf32>, vector<8x8xf32> -> vector<8x8xf32>
    %c0_39 = arith.constant 0 : index
    %c24 = arith.constant 24 : index
    %106 = vector.load %arg9[%c0_39, %c24] : memref<16x32xf32, #tpu.memory_space<vmem>>, vector<8x8xf32>
    tpu.vector_store %arg9[%c0_39, %c24], %105 {strides = array<i32>} : memref<16x32xf32, #tpu.memory_space<vmem>>, vector<8x8xf32>,
    %107 = vector.extract_strided_slice %2 {offsets = [8, 0], sizes = [8, 8], strides = [1, 1]} : vector<16x96xf32> to vector<8x8xf32>
    %108 = vector.extract_strided_slice %2 {offsets = [8, 32], sizes = [8, 8], strides = [1, 1]} : vector<16x96xf32> to vector<8x8xf32>
    %109 = vector.extract_strided_slice %2 {offsets = [8, 64], sizes = [8, 8], strides = [1, 1]} : vector<16x96xf32> to vector<8x8xf32>
    %cst_40 = arith.constant dense<0.000000e+00> : vector<8x8xf32>
    %110 = tpu.matmul %107, %108, %cst_40 {dimension_numbers = #tpu.dot_dimension_numbers<[1], [1], [0], [0], [0, 0, 1, 0], [], []>} : vector<8x8xf32>, vector<8x8xf32>, vector<8x8xf32> -> vector<8x8xf32>
    %cst_41 = arith.constant 0.353553385 : f32
    %111 = vector.broadcast %cst_41 : f32 to vector<8x8xf32>
    %112 = arith.mulf %110, %111 : vector<8x8xf32>
    %cst_42 = arith.constant dense<0xFF800000> : vector<8xf32>
    %113 = vector.multi_reduction <maximumf>, %112, %cst_42 [1] : vector<8x8xf32> to vector<8xf32>
    %114 = vector.shape_cast %113 : vector<8xf32> to vector<8x1xf32>
    %115 = vector.broadcast %114 : vector<8x1xf32> to vector<8x8xf32>
    %116 = arith.subf %112, %115 : vector<8x8xf32>
    %117 = math.exp %116 : vector<8x8xf32>
    %cst_43 = arith.constant dense<0.000000e+00> : vector<8xf32>
    %118 = vector.multi_reduction <add>, %117, %cst_43 [1] : vector<8x8xf32> to vector<8xf32>
    %119 = vector.shape_cast %118 : vector<8xf32> to vector<8x1xf32>
    %120 = tpu.reciprocal %119 {approx = true} : vector<8x1xf32> -> vector<8x1xf32>
    %121 = arith.mulf %119, %120 : vector<8x1xf32>
    %cst_44 = arith.constant 2.000000e+00 : f32
    %122 = vector.broadcast %cst_44 : f32 to vector<8x1xf32>
    %123 = arith.subf %122, %121 : vector<8x1xf32>
    %124 = arith.mulf %120, %123 : vector<8x1xf32>
    %125 = vector.broadcast %124 : vector<8x1xf32> to vector<8x8xf32>
    %126 = arith.mulf %117, %125 : vector<8x8xf32>
    %cst_45 = arith.constant 1.000000e+00 : f32
    %127 = vector.broadcast %cst_45 : f32 to vector<8x8xf32>
    %128 = arith.mulf %126, %127 : vector<8x8xf32>
    %cst_46 = arith.constant 0.000000e+00 : f32
    %129 = vector.broadcast %cst_46 : f32 to vector<8x8xf32>
    %130 = arith.addf %128, %129 : vector<8x8xf32>
    %cst_47 = arith.constant dense<0.000000e+00> : vector<8x8xf32>
    %131 = tpu.matmul %130, %109, %cst_47 {dimension_numbers = #tpu.dot_dimension_numbers<[1], [0], [0], [1], [0, 0, 1, 1], [], []>} : vector<8x8xf32>, vector<8x8xf32>, vector<8x8xf32> -> vector<8x8xf32>
    %c8_48 = arith.constant 8 : index
    %c0_49 = arith.constant 0 : index
    %132 = vector.load %arg9[%c8_48, %c0_49] : memref<16x32xf32, #tpu.memory_space<vmem>>, vector<8x8xf32>
    tpu.vector_store %arg9[%c8_48, %c0_49], %131 {strides = array<i32>} : memref<16x32xf32, #tpu.memory_space<vmem>>, vector<8x8xf32>,
    %133 = vector.extract_strided_slice %2 {offsets = [8, 8], sizes = [8, 8], strides = [1, 1]} : vector<16x96xf32> to vector<8x8xf32>
    %134 = vector.extract_strided_slice %2 {offsets = [8, 40], sizes = [8, 8], strides = [1, 1]} : vector<16x96xf32> to vector<8x8xf32>
    %135 = vector.extract_strided_slice %2 {offsets = [8, 72], sizes = [8, 8], strides = [1, 1]} : vector<16x96xf32> to vector<8x8xf32>
    %cst_50 = arith.constant dense<0.000000e+00> : vector<8x8xf32>
    %136 = tpu.matmul %133, %134, %cst_50 {dimension_numbers = #tpu.dot_dimension_numbers<[1], [1], [0], [0], [0, 0, 1, 0], [], []>} : vector<8x8xf32>, vector<8x8xf32>, vector<8x8xf32> -> vector<8x8xf32>
    %cst_51 = arith.constant 0.353553385 : f32
    %137 = vector.broadcast %cst_51 : f32 to vector<8x8xf32>
    %138 = arith.mulf %136, %137 : vector<8x8xf32>
    %cst_52 = arith.constant dense<0xFF800000> : vector<8xf32>
    %139 = vector.multi_reduction <maximumf>, %138, %cst_52 [1] : vector<8x8xf32> to vector<8xf32>
    %140 = vector.shape_cast %139 : vector<8xf32> to vector<8x1xf32>
    %141 = vector.broadcast %140 : vector<8x1xf32> to vector<8x8xf32>
    %142 = arith.subf %138, %141 : vector<8x8xf32>
    %143 = math.exp %142 : vector<8x8xf32>
    %cst_53 = arith.constant dense<0.000000e+00> : vector<8xf32>
    %144 = vector.multi_reduction <add>, %143, %cst_53 [1] : vector<8x8xf32> to vector<8xf32>
    %145 = vector.shape_cast %144 : vector<8xf32> to vector<8x1xf32>
    %146 = tpu.reciprocal %145 {approx = true} : vector<8x1xf32> -> vector<8x1xf32>
    %147 = arith.mulf %145, %146 : vector<8x1xf32>
    %cst_54 = arith.constant 2.000000e+00 : f32
    %148 = vector.broadcast %cst_54 : f32 to vector<8x1xf32>
    %149 = arith.subf %148, %147 : vector<8x1xf32>
    %150 = arith.mulf %146, %149 : vector<8x1xf32>
    %151 = vector.broadcast %150 : vector<8x1xf32> to vector<8x8xf32>
    %152 = arith.mulf %143, %151 : vector<8x8xf32>
    %cst_55 = arith.constant 1.000000e+00 : f32
    %153 = vector.broadcast %cst_55 : f32 to vector<8x8xf32>
    %154 = arith.mulf %152, %153 : vector<8x8xf32>
    %cst_56 = arith.constant 0.000000e+00 : f32
    %155 = vector.broadcast %cst_56 : f32 to vector<8x8xf32>
    %156 = arith.addf %154, %155 : vector<8x8xf32>
    %cst_57 = arith.constant dense<0.000000e+00> : vector<8x8xf32>
    %157 = tpu.matmul %156, %135, %cst_57 {dimension_numbers = #tpu.dot_dimension_numbers<[1], [0], [0], [1], [0, 0, 1, 1], [], []>} : vector<8x8xf32>, vector<8x8xf32>, vector<8x8xf32> -> vector<8x8xf32>
    %c8_58 = arith.constant 8 : index
    %c8_59 = arith.constant 8 : index
    %158 = vector.load %arg9[%c8_58, %c8_59] : memref<16x32xf32, #tpu.memory_space<vmem>>, vector<8x8xf32>
    tpu.vector_store %arg9[%c8_58, %c8_59], %157 {strides = array<i32>} : memref<16x32xf32, #tpu.memory_space<vmem>>, vector<8x8xf32>,
    %159 = vector.extract_strided_slice %2 {offsets = [8, 16], sizes = [8, 8], strides = [1, 1]} : vector<16x96xf32> to vector<8x8xf32>
    %160 = vector.extract_strided_slice %2 {offsets = [8, 48], sizes = [8, 8], strides = [1, 1]} : vector<16x96xf32> to vector<8x8xf32>
    %161 = vector.extract_strided_slice %2 {offsets = [8, 80], sizes = [8, 8], strides = [1, 1]} : vector<16x96xf32> to vector<8x8xf32>
    %cst_60 = arith.constant dense<0.000000e+00> : vector<8x8xf32>
    %162 = tpu.matmul %159, %160, %cst_60 {dimension_numbers = #tpu.dot_dimension_numbers<[1], [1], [0], [0], [0, 0, 1, 0], [], []>} : vector<8x8xf32>, vector<8x8xf32>, vector<8x8xf32> -> vector<8x8xf32>
    %cst_61 = arith.constant 0.353553385 : f32
    %163 = vector.broadcast %cst_61 : f32 to vector<8x8xf32>
    %164 = arith.mulf %162, %163 : vector<8x8xf32>
    %cst_62 = arith.constant dense<0xFF800000> : vector<8xf32>
    %165 = vector.multi_reduction <maximumf>, %164, %cst_62 [1] : vector<8x8xf32> to vector<8xf32>
    %166 = vector.shape_cast %165 : vector<8xf32> to vector<8x1xf32>
    %167 = vector.broadcast %166 : vector<8x1xf32> to vector<8x8xf32>
    %168 = arith.subf %164, %167 : vector<8x8xf32>
    %169 = math.exp %168 : vector<8x8xf32>
    %cst_63 = arith.constant dense<0.000000e+00> : vector<8xf32>
    %170 = vector.multi_reduction <add>, %169, %cst_63 [1] : vector<8x8xf32> to vector<8xf32>
    %171 = vector.shape_cast %170 : vector<8xf32> to vector<8x1xf32>
    %172 = tpu.reciprocal %171 {approx = true} : vector<8x1xf32> -> vector<8x1xf32>
    %173 = arith.mulf %171, %172 : vector<8x1xf32>
    %cst_64 = arith.constant 2.000000e+00 : f32
    %174 = vector.broadcast %cst_64 : f32 to vector<8x1xf32>
    %175 = arith.subf %174, %173 : vector<8x1xf32>
    %176 = arith.mulf %172, %175 : vector<8x1xf32>
    %177 = vector.broadcast %176 : vector<8x1xf32> to vector<8x8xf32>
    %178 = arith.mulf %169, %177 : vector<8x8xf32>
    %cst_65 = arith.constant 1.000000e+00 : f32
    %179 = vector.broadcast %cst_65 : f32 to vector<8x8xf32>
    %180 = arith.mulf %178, %179 : vector<8x8xf32>
    %cst_66 = arith.constant 0.000000e+00 : f32
    %181 = vector.broadcast %cst_66 : f32 to vector<8x8xf32>
    %182 = arith.addf %180, %181 : vector<8x8xf32>
    %cst_67 = arith.constant dense<0.000000e+00> : vector<8x8xf32>
    %183 = tpu.matmul %182, %161, %cst_67 {dimension_numbers = #tpu.dot_dimension_numbers<[1], [0], [0], [1], [0, 0, 1, 1], [], []>} : vector<8x8xf32>, vector<8x8xf32>, vector<8x8xf32> -> vector<8x8xf32>
    %c8_68 = arith.constant 8 : index
    %c16_69 = arith.constant 16 : index
    %184 = vector.load %arg9[%c8_68, %c16_69] : memref<16x32xf32, #tpu.memory_space<vmem>>, vector<8x8xf32>
    tpu.vector_store %arg9[%c8_68, %c16_69], %183 {strides = array<i32>} : memref<16x32xf32, #tpu.memory_space<vmem>>, vector<8x8xf32>,
    %185 = vector.extract_strided_slice %2 {offsets = [8, 24], sizes = [8, 8], strides = [1, 1]} : vector<16x96xf32> to vector<8x8xf32>
    %186 = vector.extract_strided_slice %2 {offsets = [8, 56], sizes = [8, 8], strides = [1, 1]} : vector<16x96xf32> to vector<8x8xf32>
    %187 = vector.extract_strided_slice %2 {offsets = [8, 88], sizes = [8, 8], strides = [1, 1]} : vector<16x96xf32> to vector<8x8xf32>
    %cst_70 = arith.constant dense<0.000000e+00> : vector<8x8xf32>
    %188 = tpu.matmul %185, %186, %cst_70 {dimension_numbers = #tpu.dot_dimension_numbers<[1], [1], [0], [0], [0, 0, 1, 0], [], []>} : vector<8x8xf32>, vector<8x8xf32>, vector<8x8xf32> -> vector<8x8xf32>
    %cst_71 = arith.constant 0.353553385 : f32
    %189 = vector.broadcast %cst_71 : f32 to vector<8x8xf32>
    %190 = arith.mulf %188, %189 : vector<8x8xf32>
    %cst_72 = arith.constant dense<0xFF800000> : vector<8xf32>
    %191 = vector.multi_reduction <maximumf>, %190, %cst_72 [1] : vector<8x8xf32> to vector<8xf32>
    %192 = vector.shape_cast %191 : vector<8xf32> to vector<8x1xf32>
    %193 = vector.broadcast %192 : vector<8x1xf32> to vector<8x8xf32>
    %194 = arith.subf %190, %193 : vector<8x8xf32>
    %195 = math.exp %194 : vector<8x8xf32>
    %cst_73 = arith.constant dense<0.000000e+00> : vector<8xf32>
    %196 = vector.multi_reduction <add>, %195, %cst_73 [1] : vector<8x8xf32> to vector<8xf32>
    %197 = vector.shape_cast %196 : vector<8xf32> to vector<8x1xf32>
    %198 = tpu.reciprocal %197 {approx = true} : vector<8x1xf32> -> vector<8x1xf32>
    %199 = arith.mulf %197, %198 : vector<8x1xf32>
    %cst_74 = arith.constant 2.000000e+00 : f32
    %200 = vector.broadcast %cst_74 : f32 to vector<8x1xf32>
    %201 = arith.subf %200, %199 : vector<8x1xf32>
    %202 = arith.mulf %198, %201 : vector<8x1xf32>
    %203 = vector.broadcast %202 : vector<8x1xf32> to vector<8x8xf32>
    %204 = arith.mulf %195, %203 : vector<8x8xf32>
    %cst_75 = arith.constant 1.000000e+00 : f32
    %205 = vector.broadcast %cst_75 : f32 to vector<8x8xf32>
    %206 = arith.mulf %204, %205 : vector<8x8xf32>
    %cst_76 = arith.constant 0.000000e+00 : f32
    %207 = vector.broadcast %cst_76 : f32 to vector<8x8xf32>
    %208 = arith.addf %206, %207 : vector<8x8xf32>
    %cst_77 = arith.constant dense<0.000000e+00> : vector<8x8xf32>
    %209 = tpu.matmul %208, %187, %cst_77 {dimension_numbers = #tpu.dot_dimension_numbers<[1], [0], [0], [1], [0, 0, 1, 1], [], []>} : vector<8x8xf32>, vector<8x8xf32>, vector<8x8xf32> -> vector<8x8xf32>
    %c8_78 = arith.constant 8 : index
    %c24_79 = arith.constant 24 : index
    %210 = vector.load %arg9[%c8_78, %c24_79] : memref<16x32xf32, #tpu.memory_space<vmem>>, vector<8x8xf32>
    tpu.vector_store %arg9[%c8_78, %c24_79], %209 {strides = array<i32>} : memref<16x32xf32, #tpu.memory_space<vmem>>, vector<8x8xf32>,
    %c0_80 = arith.constant 0 : index
    %c0_81 = arith.constant 0 : index
    %211 = vector.load %arg9[%c0_80, %c0_81] : memref<16x32xf32, #tpu.memory_space<vmem>>, vector<16x32xf32>
    %c0_82 = arith.constant 0 : index
    %c0_83 = arith.constant 0 : index
    %212 = vector.load %arg3[%c0_82, %c0_83] : memref<32x32xf32, #tpu.memory_space<vmem>>, vector<32x32xf32>
    %cst_84 = arith.constant dense<0.000000e+00> : vector<16x32xf32>
    %213 = tpu.matmul %211, %212, %cst_84 {dimension_numbers = #tpu.dot_dimension_numbers<[1], [0], [0], [1], [0, 0, 1, 1], [], []>} : vector<16x32xf32>, vector<32x32xf32>, vector<16x32xf32> -> vector<16x32xf32>
    %214 = arith.addf %0, %213 : vector<16x32xf32>
    %c0_85 = arith.constant 0 : index
    %c0_86 = arith.constant 0 : index
    %215 = vector.load %arg4[%c0_85, %c0_86] : memref<32x128xf32, #tpu.memory_space<vmem>>, vector<32x128xf32>
    %cst_87 = arith.constant dense<0.000000e+00> : vector<16x128xf32>
    %216 = tpu.matmul %214, %215, %cst_87 {dimension_numbers = #tpu.dot_dimension_numbers<[1], [0], [0], [1], [0, 0, 1, 1], [], []>} : vector<16x32xf32>, vector<32x128xf32>, vector<16x128xf32> -> vector<16x128xf32>
    %c0_88 = arith.constant 0 : index
    %c0_89 = arith.constant 0 : index
    %217 = vector.load %arg5[%c0_88, %c0_89] : memref<1x128xf32, #tpu.memory_space<vmem>>, vector<1x128xf32>
    %218 = vector.broadcast %217 : vector<1x128xf32> to vector<16x128xf32>
    %219 = arith.addf %216, %218 : vector<16x128xf32>
    %cst_90 = arith.constant 0.000000e+00 : f32
    %220 = vector.broadcast %cst_90 : f32 to vector<16x128xf32>
    %221 = arith.maximumf %219, %220 : vector<16x128xf32>
    %c0_91 = arith.constant 0 : index
    %c0_92 = arith.constant 0 : index
    %222 = vector.load %arg6[%c0_91, %c0_92] : memref<128x32xf32, #tpu.memory_space<vmem>>, vector<128x32xf32>
    %cst_93 = arith.constant dense<0.000000e+00> : vector<16x32xf32>
    %223 = tpu.matmul %221, %222, %cst_93 {dimension_numbers = #tpu.dot_dimension_numbers<[1], [0], [0], [1], [0, 0, 1, 1], [], []>} : vector<16x128xf32>, vector<128x32xf32>, vector<16x32xf32> -> vector<16x32xf32>
    %c0_94 = arith.constant 0 : index
    %c0_95 = arith.constant 0 : index
    %224 = vector.load %arg7[%c0_94, %c0_95] : memref<1x32xf32, #tpu.memory_space<vmem>>, vector<1x32xf32>
    %225 = vector.broadcast %224 : vector<1x32xf32> to vector<16x32xf32>
    %226 = arith.addf %223, %225 : vector<16x32xf32>
    %227 = arith.addf %214, %226 : vector<16x32xf32>
    %c0_96 = arith.constant 0 : index
    %c0_97 = arith.constant 0 : index
    %228 = vector.load %arg8[%c0_96, %c0_97] : memref<16x32xf32, #tpu.memory_space<vmem>>, vector<16x32xf32>
    tpu.vector_store %arg8[%c0_96, %c0_97], %227 {strides = array<i32>} : memref<16x32xf32, #tpu.memory_space<vmem>>, vector<16x32xf32>,
    return
  }
  func.func @transform_0(%arg0: i32) -> (i32, i32) {
    %c0_i32 = arith.constant 0 : i32
    %c0_i32_0 = arith.constant 0 : i32
    %c0_i32_1 = arith.constant 0 : i32
    return %c0_i32, %c0_i32_0 : i32, i32
  }
  func.func @transform_1(%arg0: i32) -> (i32, i32) {
    %c0_i32 = arith.constant 0 : i32
    %c0_i32_0 = arith.constant 0 : i32
    %c0_i32_1 = arith.constant 0 : i32
    return %c0_i32, %c0_i32_0 : i32, i32
  }
  func.func @transform_2(%arg0: i32) -> (i32, i32) {
    %c0_i32 = arith.constant 0 : i32
    %c0_i32_0 = arith.constant 0 : i32
    %c0_i32_1 = arith.constant 0 : i32
    return %c0_i32, %c0_i32_0 : i32, i32
  }
  func.func @transform_3(%arg0: i32) -> (i32, i32) {
    %c0_i32 = arith.constant 0 : i32
    %c0_i32_0 = arith.constant 0 : i32
    %c0_i32_1 = arith.constant 0 : i32
    return %c0_i32, %c0_i32_0 : i32, i32
  }
  func.func @transform_4(%arg0: i32) -> (i32, i32) {
    %c0_i32 = arith.constant 0 : i32
    %c0_i32_0 = arith.constant 0 : i32
    %c0_i32_1 = arith.constant 0 : i32
    return %c0_i32, %c0_i32_0 : i32, i32
  }
  func.func @transform_5(%arg0: i32) -> (i32, i32) {
    %c0_i32 = arith.constant 0 : i32
    %c0_i32_0 = arith.constant 0 : i32
    %c0_i32_1 = arith.constant 0 : i32
    return %c0_i32, %c0_i32_0 : i32, i32
  }
  func.func @transform_6(%arg0: i32) -> (i32, i32) {
    %c0_i32 = arith.constant 0 : i32
    %c0_i32_0 = arith.constant 0 : i32
    %c0_i32_1 = arith.constant 0 : i32
    return %c0_i32, %c0_i32_0 : i32, i32
  }
  func.func @transform_7(%arg0: i32) -> (i32, i32) {
    %c0_i32 = arith.constant 0 : i32
    %c0_i32_0 = arith.constant 0 : i32
    %c0_i32_1 = arith.constant 0 : i32
    return %c0_i32, %c0_i32_0 : i32, i32
  }
}

</mosaic_0001>

<bundles_post_ra>
// kernel: transformer_block.1
= control target key start
LH: loop header
LB: loop body
LE: loop exit
PB: predicated region body
PF: predicated region fallthrough
CT: control target
= control target key end

     0   :  { %vm33_vm0 = vcmask 261120   ;;  %s2462_s0 = inlined_call_operand.vmem [shape: f32[16,32], index: 0, kind: input, shape index: {}]   ;;  %s2463_s1 = inlined_call_operand.vmem [shape: f32[32,96], index: 1, kind: input, shape index: {}]   ;;  %s2464_s2 = inlined_call_operand.vmem [shape: f32[32,32], index: 2, kind: input, shape index: {}]   ;;  %s2465_s3 = inlined_call_operand.vmem [shape: f32[32,128], index: 3, kind: input, shape index: {}]   ;;  %s2466_s4 = inlined_call_operand.vmem [shape: f32[1,128], index: 4, kind: input, shape index: {}]   ;;  %s2467_s5 = inlined_call_operand.vmem [shape: f32[128,32], index: 5, kind: input, shape index: {}]   ;;  %s2468_s6 = inlined_call_operand.vmem [shape: f32[1,32], index: 6, kind: input, shape index: {}]   ;;  %s2469_s7 = inlined_call_operand.hbm [shape: f32[16,32], index: 7, kind: output, shape index: {}]  }
   0x1   :  { %v32_v0 = vld [vmem:[%s2463_s1 + $0x18] sm:$0xff]  ;;  %v31_v1 = vld [vmem:[%s2463_s1 + $0x10] sm:$0xff]  ;;  %v2197_v2 = vld [vmem:[%s2462_s0] sm:$0xff] }
   0x2   :  { %1910 = vmatprep.subr.mxu1 %v32_v0  ;;  %v30_v3 = vld [vmem:[%s2463_s1 + $0x8] sm:$0xff]  ;;  %1918 = vmatprep.mubr.msk.f32.mxu1 %vm33_vm0, %v2197_v2 }
   0x3   :  { %1911 = vmatpush3.msra.mxu1 %v32_v0 }
   0x4   :  { %12 = vsyncpa [#allocation4], 0  ;;  %1912 = vmatprep.subr.mxu1 %v31_v1  ;;  %v29_v4 = vld [vmem:[%s2463_s1] sm:$0xff]  ;;  %v2210_v5 = vld [vmem:[%s2462_s0 + $0x8] sm:$0xff]  ;;  %v2130_v6 = vmov 0.0   ;;  %vm2131_vm1 = vmmov 0  }
   0x5   :  { %1913 = vmatpush3.msra.mxu1 %v31_v1  ;;  %1931 = vmatprep.subr.mxu0 %v2130_v6  ;;  %s2132_s0 = smov 120   ;;  %s2133_s1 = smov 96   ;;  %vm118_vm2 = vcmask 64512   ;;  %vm460_vm3 = vcmask 130112   ;;  %vm636_vm4 = vcmask 195712   ;;  %vm812_vm5 = vcmask 261312  }
   0x6   :  { %1914 = vmatprep.subr.mxu1 %v30_v3  ;;  %1933 = vmatprep.mubr.msk.f32.mxu0 %vm2131_vm1, %v2130_v6  ;;  %s2134_s13 = smov 80   ;;  %s2135_s14 = smov 88  }
   0x7   :  { %1915 = vmatpush3.msra.mxu1 %v30_v3  ;;  %s2136_s15 = smov 72   ;;  %s2137_s16 = smov 112  }
   0x8   :  { %1916 = vmatprep.subr.mxu1 %v29_v4  ;;  %s2138_s17 = smov 104   ;;  %s2139_s18 = smov 64  }
   0x9   :  { %1917 = vmatpush3.msra.mxu1 %v29_v4  ;;  %s2140_s19 = smov 48   ;;  %s2141_s20 = smov 56  }
   0xa   :  { %1919 = vmatmul.mubr.msk.f32.vlgmr.msra.gmra.mxu1 %vm33_vm0, %v2210_v5  ;;  %1921 = vmatprep.subr.mxu1 %v2130_v6  ;;  %s2142_s21 = smov 40   ;;  %s2143_s22 = smov 8  }
   0xb   :  { %1923 = vmatprep.mubr.msk.f32.mxu1 %vm2131_vm1, %v2130_v6  ;;  %s2144_s23 = smov 16   ;;  %s2145_s24 = smov 24  }
  0xca   :  { %v2220_v7 = vpop.f32.mrf.mxu1 }
  0xcc   :  { %v2222_v8 = vpop.f32.mrf.mxu1 }
  0xcd   :  { %286 = vrot.lane.b32.xlu1 %v2222_v8, %s2132_s0  ;;  %116 = vrot.lane.b32.xlu0 %v2222_v8, %s2133_s1 }
  0xd1   :  { %464 = vrot.lane.b32.xlu1 %v2222_v8, %s2134_s13  ;;  %288 = vrot.lane.b32.xlu0 %v2222_v8, %s2135_s14 }
  0xd5   :  { %640 = vrot.lane.b32.xlu1 %v2222_v8, %s2136_s15  ;;  %462 = vrot.lane.b32.xlu0 %v2222_v8, %s2137_s16 }
  0xd9   :  { %815 = vrot.lane.b32.xlu1 %v2220_v7, %s2133_s1  ;;  %638 = vrot.lane.b32.xlu0 %v2222_v8, %s2138_s17 }
  0xdd   :  { %984 = vrot.lane.b32.xlu1 %v2220_v7, %s2132_s0  ;;  %986 = vrot.lane.b32.xlu0 %v2220_v7, %s2135_s14 }
  0xe1   :  { %1159 = vrot.lane.b32.xlu1 %v2220_v7, %s2137_s16  ;;  %1161 = vrot.lane.b32.xlu0 %v2220_v7, %s2134_s13 }
  0xe5   :  { %1334 = vrot.lane.b32.xlu1 %v2220_v7, %s2138_s17  ;;  %1336 = vrot.lane.b32.xlu0 %v2220_v7, %s2136_s15 }
  0xe9   :  { %209 = vrot.lane.b32.xlu1 %v2222_v8, %s2139_s18 }
 0x13f   :  { %v287_v9 = vpop.permute.xlu1 %286  ;;  %v117_v10 = vpop.permute.xlu0 %116 }
 0x140   :  { %1922 = vmatpush3.xpose.msk.msra.mxu1 %vm118_vm2, %v117_v10 }
 0x141   :  { %1926 = vmatprep.subr.mxu1 %v2130_v6 }
 0x143   :  { %v465_v11 = vpop.permute.xlu1 %464  ;;  %1924 = vmatmul.mubr.msk.f32.vlgmr.msra.gmra.mxu1 %vm118_vm2, %v2222_v8  ;;  %v289_v12 = vpop.permute.xlu0 %288 }
 0x144   :  { %1932 = vmatpush3.xpose.msk.msra.mxu0 %vm118_vm2, %v289_v12  ;;  %1928 = vmatprep.mubr.msk.f32.mxu1 %vm2131_vm1, %v2130_v6 }
 0x145   :  { %1941 = vmatprep.subr.mxu0 %v2130_v6 }
 0x147   :  { %v641_v13 = vpop.permute.xlu1 %640  ;;  %1934 = vmatmul.mubr.msk.f32.vlgmr.msra.gmra.mxu0 %vm118_vm2, %v287_v9  ;;  %v463_v14 = vpop.permute.xlu0 %462 }
 0x148   :  { %1942 = vmatpush3.xpose.msk.msra.mxu0 %vm118_vm2, %v465_v11  ;;  %1943 = vmatprep.mubr.msk.f32.mxu0 %vm2131_vm1, %v2130_v6 }
 0x149   :  { %1951 = vmatprep.subr.mxu0 %v2130_v6 }
 0x14b   :  { %v816_v15 = vpop.permute.xlu1 %815  ;;  %1944 = vmatmul.mubr.msk.f32.vlgmr.msra.gmra.mxu0 %vm118_vm2, %v463_v14  ;;  %v639_v16 = vpop.permute.xlu0 %638 }
 0x14c   :  { %1952 = vmatpush3.xpose.msk.msra.mxu0 %vm118_vm2, %v641_v13  ;;  %1953 = vmatprep.mubr.msk.f32.mxu0 %vm2131_vm1, %v2130_v6 }
 0x14d   :  { %1961 = vmatprep.subr.mxu0 %v2130_v6 }
 0x14f   :  { %v985_v17 = vpop.permute.xlu1 %984  ;;  %1954 = vmatmul.mubr.msk.f32.vlgmr.msra.gmra.mxu0 %vm118_vm2, %v639_v16  ;;  %v987_v18 = vpop.permute.xlu0 %986 }
 0x150   :  { %1962 = vmatpush3.xpose.msk.msra.mxu0 %vm118_vm2, %v816_v15  ;;  %1963 = vmatprep.mubr.msk.f32.mxu0 %vm2131_vm1, %v2130_v6 }
 0x151   :  { %1971 = vmatprep.subr.mxu0 %v2130_v6 }
 0x153   :  { %v1160_v19 = vpop.permute.xlu1 %1159  ;;  %1964 = vmatmul.mubr.msk.f32.vlgmr.msra.gmra.mxu0 %vm118_vm2, %v2220_v7  ;;  %v1162_v20 = vpop.permute.xlu0 %1161 }
 0x154   :  { %1972 = vmatpush3.xpose.msk.msra.mxu0 %vm118_vm2, %v987_v18  ;;  %1973 = vmatprep.mubr.msk.f32.mxu0 %vm2131_vm1, %v2130_v6 }
 0x155   :  { %1981 = vmatprep.subr.mxu0 %v2130_v6 }
 0x157   :  { %v1335_v21 = vpop.permute.xlu1 %1334  ;;  %1974 = vmatmul.mubr.msk.f32.vlgmr.msra.gmra.mxu0 %vm118_vm2, %v985_v17  ;;  %v1337_v22 = vpop.permute.xlu0 %1336 }
 0x158   :  { %1982 = vmatpush3.xpose.msk.msra.mxu0 %vm118_vm2, %v1162_v20  ;;  %1983 = vmatprep.mubr.msk.f32.mxu0 %vm2131_vm1, %v2130_v6 }
 0x159   :  { %1991 = vmatprep.subr.mxu0 %v2130_v6 }
 0x15b   :  { %v210_v23 = vpop.permute.xlu1 %209  ;;  %1984 = vmatmul.mubr.msk.f32.vlgmr.msra.gmra.mxu0 %vm118_vm2, %v1160_v19 }
 0x15c   :  { %1927 = vmatpush3.msra.mxu1 %v210_v23  ;;  %1992 = vmatpush3.xpose.msk.msra.mxu0 %vm118_vm2, %v1337_v22 }
 0x15d   :  { %1993 = vmatprep.mubr.msk.f32.mxu0 %vm2131_vm1, %v2130_v6  ;;  %1936 = vmatprep.subr.mxu1 %v2130_v6 }
 0x15f   :  { %1994 = vmatmul.mubr.msk.f32.vlgmr.msra.gmra.mxu0 %vm118_vm2, %v1335_v21 }
 0x203   :  { %v189_v24 = vpop.f32.mrf.mxu1 }
 0x204   :  { %v193_v25 = vmul.f32 0.35355338, %v189_v24 }
 0x205   :  { %v1925_v26 = vpop.f32.mrf.mxu1 }
 0x206   :  { %v194_v27 = vsel %vm118_vm2, %v193_v25, -inf }
 0x207   :  { %195 = vmax.xlane.f32.xlu0 %v194_v27  ;;  %v360_v28 = vpop.f32.mrf.mxu0 }
 0x208   :  { %v364_v29 = vmul.f32 0.35355338, %v360_v28 }
 0x209   :  { %v1935_v30 = vpop.f32.mrf.mxu0 }
 0x20a   :  { %v365_v31 = vsel %vm118_vm2, %v364_v29, -inf }
 0x20b   :  { %366 = vmax.xlane.f32.xlu1 %v365_v31  ;;  %v536_v32 = vpop.f32.mrf.mxu0 }
 0x20c   :  { %v540_v33 = vmul.f32 0.35355338, %v536_v32 }
 0x20d   :  { %v1945_v34 = vpop.f32.mrf.mxu0 }
 0x20e   :  { %v541_v35 = vsel %vm118_vm2, %v540_v33, -inf }
 0x20f   :  { %542 = vmax.xlane.f32.xlu0 %v541_v35  ;;  %v712_v36 = vpop.f32.mrf.mxu0 }
 0x210   :  { %v716_v37 = vmul.f32 0.35355338, %v712_v36 }
 0x211   :  { %v1955_v38 = vpop.f32.mrf.mxu0 }
 0x212   :  { %v717_v39 = vsel %vm118_vm2, %v716_v37, -inf }
 0x213   :  { %718 = vmax.xlane.f32.xlu0 %v717_v39  ;;  %v887_v40 = vpop.f32.mrf.mxu0 }
 0x214   :  { %v2284_v41 = vmul.f32 0.35355338, %v887_v40 }
 0x215   :  { %v1965_v42 = vpop.f32.mrf.mxu0 }
 0x216   :  { %v892_v43 = vsel %vm118_vm2, %v2284_v41, -inf }
 0x217   :  { %893 = vmax.xlane.f32.xlu1 %v892_v43  ;;  %v1058_v44 = vpop.f32.mrf.mxu0 }
 0x218   :  { %v1062_v45 = vmul.f32 0.35355338, %v1058_v44 }
 0x219   :  { %v1975_v46 = vpop.f32.mrf.mxu0 }
 0x21a   :  { %v1063_v47 = vsel %vm118_vm2, %v1062_v45, -inf }
 0x21b   :  { %1064 = vmax.xlane.f32.xlu0 %v1063_v47  ;;  %v1233_v48 = vpop.f32.mrf.mxu0 }
 0x21c   :  { %v1237_v49 = vmul.f32 0.35355338, %v1233_v48 }
 0x21d   :  { %v1985_v50 = vpop.f32.mrf.mxu0 }
 0x21e   :  { %v1238_v51 = vsel %vm118_vm2, %v1237_v49, -inf }
 0x21f   :  { %1239 = vmax.xlane.f32.xlu1 %v1238_v51  ;;  %v1408_v52 = vpop.f32.mrf.mxu0 }
 0x220   :  { %v1412_v53 = vmul.f32 0.35355338, %v1408_v52 }
 0x221   :  { %v1995_v54 = vpop.f32.mrf.mxu0 }
 0x222   :  { %v1413_v55 = vsel %vm118_vm2, %v1412_v53, -inf }
 0x223   :  { %1414 = vmax.xlane.f32.xlu0 %v1413_v55 }
 0x230   :  { %556 = vrot.lane.b32.xlu1 %v2222_v8, %s2140_s19 }
 0x239   :  { %380 = vrot.lane.b32.xlu0 %v2222_v8, %s2141_s20 }
 0x290   :  { %v196_v56 = vpop.xlane.xlu0 %195 }
 0x291   :  { %v197_v57 = vsub.f32 %v193_v25, %v196_v56 }
 0x293   :  { %v198_v58 = vmul.f32 1.442695, %v197_v57 }
 0x294   :  { %v367_v59 = vpop.xlane.xlu1 %366 }
 0x295   :  { %2076 = vpow2.f32 %v198_v58  ;;  %v368_v60 = vsub.f32 %v364_v29, %v367_v59 }
 0x297   :  { %v369_v61 = vmul.f32 1.442695, %v368_v60 }
 0x298   :  { %v543_v62 = vpop.xlane.xlu0 %542 }
 0x299   :  { %2078 = vpow2.f32 %v369_v61  ;;  %v544_v63 = vsub.f32 %v540_v33, %v543_v62 }
 0x29b   :  { %v545_v0 = vmul.f32 1.442695, %v544_v63 }
 0x29c   :  { %v719_v1 = vpop.xlane.xlu0 %718 }
 0x29d   :  { %2080 = vpow2.f32 %v545_v0  ;;  %v720_v3 = vsub.f32 %v716_v37, %v719_v1 }
 0x29f   :  { %v721_v4 = vmul.f32 1.442695, %v720_v3 }
 0x2a0   :  { %v894_v22 = vpop.xlane.xlu1 %893 }
 0x2a1   :  { %2082 = vpow2.f32 %v721_v4  ;;  %v895_v23 = vsub.f32 %v2284_v41, %v894_v22 }
 0x2a2   :  { %v2077_v9 = vpop.eup %2076 }
 0x2a3   :  { %v200_v10 = vsel %vm118_vm2, %v2077_v9, 0.0  ;;  %v896_v25 = vmul.f32 1.442695, %v895_v23 }
 0x2a4   :  { %201 = vadd.xlane.f32.xlu1 %v200_v10  ;;  %v1065_v11 = vpop.xlane.xlu0 %1064 }
 0x2a5   :  { %v1066_v12 = vsub.f32 %v1062_v45, %v1065_v11 }
 0x2a6   :  { %v2296_v13 = vpop.eup %2078 }
 0x2a7   :  { %v1067_v14 = vmul.f32 1.442695, %v1066_v12  ;;  %v371_v15 = vsel %vm118_vm2, %v2296_v13, 0.0 }
 0x2a8   :  { %372 = vadd.xlane.f32.xlu0 %v371_v15  ;;  %v1240_v24 = vpop.xlane.xlu1 %1239 }
 0x2a9   :  { %2084 = vpow2.f32 %v1067_v14  ;;  %v1241_v26 = vsub.f32 %v1237_v49, %v1240_v24 }
 0x2aa   :  { %v2300_v16 = vpop.eup %2080  ;;  %2086 = vpow2.f32 %v896_v25 }
 0x2ab   :  { %v547_v17 = vsel %vm118_vm2, %v2300_v16, 0.0  ;;  %v1242_v27 = vmul.f32 1.442695, %v1241_v26 }
 0x2ac   :  { %548 = vadd.xlane.f32.xlu1 %v547_v17  ;;  %v1415_v28 = vpop.xlane.xlu0 %1414  ;;  %v557_v36 = vpop.permute.xlu1 %556 }
 0x2ad   :  { %2088 = vpow2.f32 %v1242_v27  ;;  %v1416_v29 = vsub.f32 %v1412_v53, %v1415_v28 }
 0x2ae   :  { %v2304_v18 = vpop.eup %2082 }
 0x2af   :  { %v723_v19 = vsel %vm118_vm2, %v2304_v18, 0.0  ;;  %v1417_v30 = vmul.f32 1.442695, %v1416_v29 }
 0x2b0   :  { %724 = vadd.xlane.f32.xlu0 %v723_v19  ;;  %v381_v37 = vpop.permute.xlu0 %380 }
 0x2b1   :  { %2090 = vpow2.f32 %v1417_v30 }
 0x2b6   :  { %v2308_v20 = vpop.eup %2084 }
 0x2b7   :  { %v1069_v21 = vsel %vm118_vm2, %v2308_v20, 0.0  ;;  %v2316_v31 = vpop.eup %2086 }
 0x2b8   :  { %1070 = vadd.xlane.f32.xlu0 %v1069_v21 }
 0x2ba   :  { %v2320_v32 = vpop.eup %2088 }
 0x2bb   :  { %v1244_v33 = vsel %vm118_vm2, %v2320_v32, 0.0 }
 0x2bd   :  { %732 = vrot.lane.b32.xlu1 %v2222_v8, %s2142_s21  ;;  %v898_v8 = vsel %vm118_vm2, %v2316_v31, 0.0 }
 0x2be   :  { %v2324_v34 = vpop.eup %2090 }
 0x2bf   :  { %v1419_v35 = vsel %vm118_vm2, %v2324_v34, 0.0 }
 0x2ce   :  { %907 = vrot.lane.b32.xlu0 %v2220_v7, %s2139_s18 }
 0x2e1   :  { %899 = vadd.xlane.f32.xlu1 %v898_v8 }
 0x2e5   :  { %1245 = vadd.xlane.f32.xlu1 %v1244_v33 }
 0x2ed   :  { %1420 = vadd.xlane.f32.xlu0 %v1419_v35 }
 0x2f6   :  { %1078 = vrot.lane.b32.xlu1 %v2220_v7, %s2141_s20 }
 0x2fa   :  { %1428 = vrot.lane.b32.xlu1 %v2220_v7, %s2142_s21 }
 0x303   :  { %1253 = vrot.lane.b32.xlu0 %v2220_v7, %s2140_s19 }
 0x32d   :  { %v202_v38 = vpop.xlane.xlu1 %201 }
 0x32e   :  { %2092 = vrcp.f32 %v202_v38 }
 0x331   :  { %v373_v39 = vpop.xlane.xlu0 %372 }
 0x332   :  { %2094 = vrcp.f32 %v373_v39 }
 0x335   :  { %v549_v40 = vpop.xlane.xlu1 %548 }
 0x336   :  { %2096 = vrcp.f32 %v549_v40 }
 0x339   :  { %v725_v41 = vpop.xlane.xlu0 %724  ;;  %v733_v60 = vpop.permute.xlu1 %732 }
 0x33a   :  { %2098 = vrcp.f32 %v725_v41 }
 0x33b   :  { %v2093_v42 = vpop.eup %2092 }
 0x33c   :  { %v204_v43 = vmul.f32 %v2093_v42, %v202_v38  ;;  %v1514_v38 = vld [vmem:[%s2464_s2 + $0x18] sm:$0xff] }
 0x33e   :  { %v205_v44 = vsub.f32 2.0, %v204_v43  ;;  %v1511_v43 = vld [vmem:[%s2464_s2] sm:$0xff] }
 0x33f   :  { %v2095_v45 = vpop.eup %2094 }
 0x340   :  { %v206_v46 = vmul.f32 %v2093_v42, %v205_v44  ;;  %v375_v47 = vmul.f32 %v2095_v45, %v373_v39  ;;  %v1513_v39 = vld [vmem:[%s2464_s2 + $0x10] sm:$0xff] }
 0x341   :  { %v1071_v59 = vpop.xlane.xlu0 %1070 }
 0x342   :  { %v207_v48 = vmul.f32 %v2077_v9, %v206_v46  ;;  %v376_v49 = vsub.f32 2.0, %v375_v47  ;;  %2100 = vrcp.f32 %v1071_v59  ;;  %v1601_v46 = vld [vmem:[%s2465_s3 + $0x18] sm:$0xff] }
 0x343   :  { %v2097_v50 = vpop.eup %2096 }
 0x344   :  { %v377_v7 = vmul.f32 %v2095_v45, %v376_v49  ;;  %v551_v51 = vmul.f32 %v2097_v50, %v549_v40  ;;  %1929 = vmatmul.mubr.msk.f32.vlgmr.msra.gmra.mxu1 %vm118_vm2, %v207_v48 }
 0x345   :  { %1937 = vmatpush3.msra.mxu1 %v381_v37  ;;  %1938 = vmatprep.mubr.msk.f32.mxu1 %vm2131_vm1, %v2130_v6  ;;  %v908_v63 = vpop.permute.xlu0 %907 }
 0x346   :  { %v378_v52 = vmul.f32 %v2296_v13, %v377_v7  ;;  %v552_v53 = vsub.f32 2.0, %v551_v51  ;;  %1946 = vmatprep.subr.mxu1 %v2130_v6 }
 0x347   :  { %v2099_v54 = vpop.eup %2098 }
 0x348   :  { %v553_v55 = vmul.f32 %v2097_v50, %v552_v53  ;;  %v727_v56 = vmul.f32 %v2099_v54, %v725_v41  ;;  %1939 = vmatmul.mubr.msk.f32.vlgmr.msra.gmra.mxu1 %vm118_vm2, %v378_v52  ;;  %v1512_v41 = vld [vmem:[%s2464_s2 + $0x8] sm:$0xff] }
 0x349   :  { %1947 = vmatpush3.msra.mxu1 %v557_v36  ;;  %1948 = vmatprep.mubr.msk.f32.mxu1 %vm2131_vm1, %v2130_v6 }
 0x34a   :  { %v554_v57 = vmul.f32 %v2300_v16, %v553_v55  ;;  %v728_v58 = vsub.f32 2.0, %v727_v56  ;;  %1956 = vmatprep.subr.mxu1 %v2130_v6 }
 0x34c   :  { %v729_v61 = vmul.f32 %v2099_v54, %v728_v58  ;;  %1949 = vmatmul.mubr.msk.f32.vlgmr.msra.gmra.mxu1 %vm118_vm2, %v554_v57  ;;  %v1600_v57 = vld [vmem:[%s2465_s3 + $0x10] sm:$0xff]  ;;  %v1599_v58 = vld [vmem:[%s2465_s3 + $0x8] sm:$0xff] }
 0x34d   :  { %1957 = vmatpush3.msra.mxu1 %v733_v60  ;;  %1958 = vmatprep.mubr.msk.f32.mxu1 %vm2131_vm1, %v2130_v6  ;;  %v1707_v60 = vld [vmem:[%s2467_s5 + $0x78] sm:$0xff] }
 0x34e   :  { %v730_v62 = vmul.f32 %v2304_v18, %v729_v61  ;;  %1966 = vmatprep.subr.mxu1 %v2130_v6  ;;  %v1706_v61 = vld [vmem:[%s2467_s5 + $0x70] sm:$0xff]  ;;  %2023 = vmatprep.subr.mxu0 %v1707_v60 }
 0x34f   :  { %v2101_v3 = vpop.eup %2100  ;;  %2024 = vmatpush3.msra.mxu0 %v1707_v60 }
 0x350   :  { %1959 = vmatmul.mubr.msk.f32.vlgmr.msra.gmra.mxu1 %vm118_vm2, %v730_v62  ;;  %v1073_v9 = vmul.f32 %v2101_v3, %v1071_v59  ;;  %v1598_v59 = vld [vmem:[%s2465_s3] sm:$0xff]  ;;  %v1705_v62 = vld [vmem:[%s2467_s5 + $0x68] sm:$0xff]  ;;  %2025 = vmatprep.subr.mxu0 %v1706_v61 }
 0x351   :  { %1967 = vmatpush3.msra.mxu1 %v908_v63  ;;  %1968 = vmatprep.mubr.msk.f32.mxu1 %vm2131_vm1, %v2130_v6  ;;  %v1704_v63 = vld [vmem:[%s2467_s5 + $0x60] sm:$0xff] }
 0x352   :  { %1976 = vmatprep.subr.mxu1 %v2130_v6  ;;  %v1074_v12 = vsub.f32 2.0, %v1073_v9  ;;  %2026 = vmatpush3.msra.mxu0 %v1706_v61  ;;  %v1699_v9 = vld [vmem:[%s2467_s5 + $0x38] sm:$0xff] }
 0x353   :  { %2027 = vmatprep.subr.mxu0 %v1705_v62 }
 0x354   :  { %v1075_v17 = vmul.f32 %v2101_v3, %v1074_v12  ;;  %2028 = vmatpush3.msra.mxu0 %v1705_v62  ;;  %v1701_v3 = vld [vmem:[%s2467_s5 + $0x48] sm:$0xff]  ;;  %v1696_v12 = vld [vmem:[%s2467_s5 + $0x20] sm:$0xff] }
 0x355   :  { %2029 = vmatprep.subr.mxu0 %v1704_v63 }
 0x356   :  { %v1076_v22 = vmul.f32 %v2308_v20, %v1075_v17  ;;  %2030 = vmatpush3.msra.mxu0 %v1704_v63  ;;  %v1695_v17 = vld [vmem:[%s2467_s5 + $0x18] sm:$0xff] }
 0x36a   :  { %v900_v0 = vpop.xlane.xlu1 %899 }
 0x36b   :  { %2102 = vrcp.f32 %v900_v0 }
 0x36e   :  { %v1246_v1 = vpop.xlane.xlu1 %1245 }
 0x36f   :  { %2104 = vrcp.f32 %v1246_v1 }
 0x372   :  { %v1079_v21 = vpop.permute.xlu1 %1078 }
 0x376   :  { %v1421_v4 = vpop.xlane.xlu0 %1420  ;;  %v1429_v29 = vpop.permute.xlu1 %1428 }
 0x377   :  { %2106 = vrcp.f32 %v1421_v4 }
 0x378   :  { %v2103_v10 = vpop.eup %2102 }
 0x379   :  { %v902_v11 = vmul.f32 %v2103_v10, %v900_v0  ;;  %v1703_v0 = vld [vmem:[%s2467_s5 + $0x58] sm:$0xff] }
 0x37a   :  { %v1254_v26 = vpop.permute.xlu0 %1253  ;;  %2031 = vmatprep.subr.mxu0 %v1703_v0 }
 0x37b   :  { %v903_v13 = vsub.f32 2.0, %v902_v11  ;;  %2032 = vmatpush3.msra.mxu0 %v1703_v0  ;;  %v1697_v11 = vld [vmem:[%s2467_s5 + $0x28] sm:$0xff] }
 0x37c   :  { %v2105_v14 = vpop.eup %2104 }
 0x37d   :  { %v904_v15 = vmul.f32 %v2103_v10, %v903_v13  ;;  %v1248_v16 = vmul.f32 %v2105_v14, %v1246_v1  ;;  %v1702_v1 = vld [vmem:[%s2467_s5 + $0x50] sm:$0xff] }
 0x37e   :  { %2033 = vmatprep.subr.mxu0 %v1702_v1  ;;  %v1698_v10 = vld [vmem:[%s2467_s5 + $0x30] sm:$0xff] }
 0x37f   :  { %v905_v18 = vmul.f32 %v2316_v31, %v904_v15  ;;  %v1249_v19 = vsub.f32 2.0, %v1248_v16  ;;  %2034 = vmatpush3.msra.mxu0 %v1702_v1 }
 0x380   :  { %2035 = vmatprep.subr.mxu0 %v1701_v3 }
 0x381   :  { %1969 = vmatmul.mubr.msk.f32.vlgmr.msra.gmra.mxu1 %vm118_vm2, %v905_v18  ;;  %v1250_v23 = vmul.f32 %v2105_v14, %v1249_v19  ;;  %2036 = vmatpush3.msra.mxu0 %v1701_v3  ;;  %v1694_v18 = vld [vmem:[%s2467_s5 + $0x10] sm:$0xff]  ;;  %v1838_v19 = vld [vmem:[%s2466_s4] ss:$0 sm:$0xff] }
 0x382   :  { %1977 = vmatpush3.msra.mxu1 %v1079_v21  ;;  %1978 = vmatprep.mubr.msk.f32.mxu1 %vm2131_vm1, %v2130_v6 }
 0x383   :  { %1986 = vmatprep.subr.mxu1 %v2130_v6  ;;  %v1251_v27 = vmul.f32 %v2320_v32, %v1250_v23 }
 0x384   :  { %v2107_v24 = vpop.eup %2106 }
 0x385   :  { %v1423_v25 = vmul.f32 %v2107_v24, %v1421_v4  ;;  %1979 = vmatmul.mubr.msk.f32.vlgmr.msra.gmra.mxu1 %vm118_vm2, %v1076_v22  ;;  %v1700_v4 = vld [vmem:[%s2467_s5 + $0x40] sm:$0xff] }
 0x386   :  { %1987 = vmatpush3.msra.mxu1 %v1254_v26  ;;  %1988 = vmatprep.mubr.msk.f32.mxu1 %vm2131_vm1, %v2130_v6 }
 0x387   :  { %v1424_v28 = vsub.f32 2.0, %v1423_v25  ;;  %1996 = vmatprep.subr.mxu1 %v2130_v6  ;;  %2037 = vmatprep.subr.mxu0 %v1700_v4 }
 0x388   :  { %2038 = vmatpush3.msra.mxu0 %v1700_v4 }
 0x389   :  { %v1425_v30 = vmul.f32 %v2107_v24, %v1424_v28  ;;  %1989 = vmatmul.mubr.msk.f32.vlgmr.msra.gmra.mxu1 %vm118_vm2, %v1251_v27  ;;  %2039 = vmatprep.subr.mxu0 %v1699_v9  ;;  %v1841_v27 = vld [vmem:[%s2468_s6] ss:$0 sm:$0xff] }
 0x38a   :  { %1997 = vmatpush3.msra.mxu1 %v1429_v29  ;;  %1998 = vmatprep.mubr.msk.f32.mxu1 %vm2131_vm1, %v2130_v6 }
 0x38b   :  { %v1426_v20 = vmul.f32 %v2324_v34, %v1425_v30  ;;  %2001 = vmatprep.subr.mxu1 %v1514_v38  ;;  %2040 = vmatpush3.msra.mxu0 %v1699_v9 }
 0x38c   :  { %2041 = vmatprep.subr.mxu0 %v1698_v10 }
 0x38d   :  { %1999 = vmatmul.mubr.msk.f32.vlgmr.msra.gmra.mxu1 %vm118_vm2, %v1426_v20  ;;  %2042 = vmatpush3.msra.mxu0 %v1698_v10 }
 0x38e   :  { %2002 = vmatpush3.msra.mxu1 %v1514_v38  ;;  %2043 = vmatprep.subr.mxu0 %v1697_v11 }
 0x38f   :  { %2003 = vmatprep.subr.mxu1 %v1513_v39  ;;  %2044 = vmatpush3.msra.mxu0 %v1697_v11 }
 0x390   :  { %2004 = vmatpush3.msra.mxu1 %v1513_v39  ;;  %2045 = vmatprep.subr.mxu0 %v1696_v12 }
 0x391   :  { %2005 = vmatprep.subr.mxu1 %v1512_v41  ;;  %2046 = vmatpush3.msra.mxu0 %v1696_v12 }
 0x392   :  { %2006 = vmatpush3.msra.mxu1 %v1512_v41  ;;  %2047 = vmatprep.subr.mxu0 %v1695_v17 }
 0x393   :  { %2007 = vmatprep.subr.mxu1 %v1511_v43  ;;  %2048 = vmatpush3.msra.mxu0 %v1695_v17 }
 0x394   :  { %2008 = vmatpush3.msra.mxu1 %v1511_v43  ;;  %2049 = vmatprep.subr.mxu0 %v1694_v18 }
 0x395   :  { %2012 = vmatprep.subr.mxu1 %v1601_v46  ;;  %2050 = vmatpush3.msra.mxu0 %v1694_v18 }
 0x404   :  { %v281_v31 = vpop.f32.mrf.mxu1 }
 0x405   :  { %285 = vst.msk [vmem:[#allocation2] sm:$0xff] %vm118_vm2, %v281_v31 }
 0x406   :  { %v1930_v8 = vpop.f32.mrf.mxu1 }
 0x408   :  { %v452_v32 = vpop.f32.mrf.mxu1 }
 0x409   :  { %457 = vrot.lane.b32.xlu0 %v452_v32, %s2143_s22 }
 0x40a   :  { %v1940_v33 = vpop.f32.mrf.mxu1 }
 0x40c   :  { %v628_v35 = vpop.f32.mrf.mxu1 }
 0x40d   :  { %633 = vrot.lane.b32.xlu1 %v628_v35, %s2144_s23 }
 0x40e   :  { %v1950_v36 = vpop.f32.mrf.mxu1 }
 0x410   :  { %v804_v37 = vpop.f32.mrf.mxu1 }
 0x411   :  { %809 = vrot.lane.b32.xlu1 %v804_v37, %s2145_s24 }
 0x412   :  { %v1960_v6 = vpop.f32.mrf.mxu1 }
 0x441   :  { %v979_v34 = vpop.f32.mrf.mxu1 }
 0x442   :  { %983 = vst.msk [vmem:[#allocation2 + $0x8] sm:$0xff] %vm118_vm2, %v979_v34 }
 0x443   :  { %v1970_v40 = vpop.f32.mrf.mxu1 }
 0x445   :  { %v1150_v42 = vpop.f32.mrf.mxu1 }
 0x446   :  { %1155 = vrot.lane.b32.xlu0 %v1150_v42, %s2143_s22 }
 0x447   :  { %v1980_v44 = vpop.f32.mrf.mxu1 }
 0x449   :  { %v1325_v45 = vpop.f32.mrf.mxu1 }
 0x44a   :  { %1330 = vrot.lane.b32.xlu0 %v1325_v45, %s2144_s23 }
 0x44b   :  { %v1990_v47 = vpop.f32.mrf.mxu1 }
 0x44d   :  { %v1500_v48 = vpop.f32.mrf.mxu1 }
 0x44e   :  { %1505 = vrot.lane.b32.xlu1 %v1500_v48, %s2145_s24 }
 0x44f   :  { %v2000_v49 = vpop.f32.mrf.mxu1 }
 0x47b   :  { %v458_v50 = vpop.permute.xlu0 %457 }
 0x47c   :  { %461 = vst.msk [vmem:[#allocation2] sm:$0xff] %vm460_vm3, %v458_v50 }
 0x47f   :  { %v634_v7 = vpop.permute.xlu1 %633 }
 0x480   :  { %637 = vst.msk [vmem:[#allocation2] sm:$0xff] %vm636_vm4, %v634_v7 }
 0x483   :  { %v810_v51 = vpop.permute.xlu1 %809 }
 0x484   :  { %813 = vst.msk [vmem:[#allocation2] sm:$0xff] %vm812_vm5, %v810_v51 }
 0x48b   :  { %v1509_v52 = vld [vmem:[#allocation2] sm:$0xff] }
 0x48c   :  { %2009 = vmatprep.mubr.msk.f32.mxu1 %vm33_vm0, %v1509_v52 }
 0x4b8   :  { %v1156_v53 = vpop.permute.xlu0 %1155 }
 0x4b9   :  { %1158 = vst.msk [vmem:[#allocation2 + $0x8] sm:$0xff] %vm460_vm3, %v1156_v53 }
 0x4bc   :  { %v1331_v54 = vpop.permute.xlu0 %1330 }
 0x4bd   :  { %1333 = vst.msk [vmem:[#allocation2 + $0x8] sm:$0xff] %vm636_vm4, %v1331_v54 }
 0x4c0   :  { %v1506_v55 = vpop.permute.xlu1 %1505 }
 0x4c1   :  { %1508 = vst.msk [vmem:[#allocation2 + $0x8] sm:$0xff] %vm812_vm5, %v1506_v55 }
 0x4c8   :  { %v1510_v56 = vld [vmem:[#allocation2 + $0x8] sm:$0xff] }
 0x4c9   :  { %2010 = vmatmul.mubr.msk.f32.vlgmr.msra.gmra.mxu1 %vm33_vm0, %v1510_v56 }
 0x4ca   :  { %2013 = vmatpush3.msra.mxu1 %v1601_v46 }
 0x4cb   :  { %2014 = vmatprep.subr.mxu1 %v1600_v57 }
 0x4cc   :  { %2015 = vmatpush3.msra.mxu1 %v1600_v57 }
 0x4cd   :  { %2016 = vmatprep.subr.mxu1 %v1599_v58 }
 0x4ce   :  { %2017 = vmatpush3.msra.mxu1 %v1599_v58 }
 0x4cf   :  { %2018 = vmatprep.subr.mxu1 %v1598_v59 }
 0x4d0   :  { %2019 = vmatpush3.msra.mxu1 %v1598_v59 }
 0x589   :  { %v2011_v13 = vpop.f32.mrf.mxu1 }
 0x58a   :  { %v1597_v16 = vadd.f32 %v2011_v13, %v2210_v5  ;;  %v1692_v5 = vld [vmem:[%s2467_s5] sm:$0xff] }
 0x58b   :  { %v1587_v14 = vpop.f32.mrf.mxu1 }
 0x58c   :  { %v1596_v15 = vadd.f32 %v1587_v14, %v2197_v2  ;;  %v1693_v2 = vld [vmem:[%s2467_s5 + $0x8] sm:$0xff]  ;;  %s2146_s5 = smov [#allocation3]  }
 0x58d   :  { %2051 = vmatprep.subr.mxu0 %v1693_v2  ;;  %s1799_s25 = sshll.u32 %s2146_s5, 4  ;;  %s1800_s25 = int_to_ptr.vmem [resolvable:$true] %s1799_s25 }
 0x58e   :  { %2020 = vmatprep.mubr.msk.f32.mxu1 %vm33_vm0, %v1596_v15  ;;  %2052 = vmatpush3.msra.mxu0 %v1693_v2  ;;  %s2108_s4 = scalar_lea.vmem %s1800_s25, 256  ;;  %p2113_p1 = scmp.lt.s32.totalorder %s1800_s25, %s1800_s25 }
 0x58f   :  { %2021 = vmatmul.mubr.msk.f32.vlgmr.msra.gmra.mxu1 %vm33_vm0, %v1597_v16  ;;  %2053 = vmatprep.subr.mxu0 %v1692_v5  ;;  %p2109_p0 = scmp.ne.s32.totalorder %s1800_s25, %s2108_s4  ;;  %p2114_p2 = scmp.lt.s32.totalorder %s2108_s4, %s2108_s4 }
 0x590   :  { %2054 = vmatpush3.msra.mxu0 %v1692_v5 }
 0x591   :  { %p2115_p3 = por %p2114_p2, %p2113_p1 }
 0x593   :  { %p2116_p4 = pnand %p2115_p3, %p2109_p0 }
 0x64f   :  { %v2022_v21 = vpop.f32.mrf.mxu1 }
 0x650   :  { %v1687_v22 = vadd.f32 %v2022_v21, %v1838_v19 }
 0x651   :  { %v1681_v23 = vpop.f32.mrf.mxu1 }
 0x652   :  { %v1682_v24 = vadd.f32 %v1838_v19, %v1681_v23  ;;  %v1691_v26 = vmax.f32 %v1687_v22, 0.0 }
 0x654   :  { %v1690_v25 = vmax.f32 %v1682_v24, 0.0 }
 0x656   :  { %2055 = vmatprep.mubr.f32.mxu0 %v1690_v25 }
 0x657   :  { %2056 = vmatmul.mubr.f32.vlgmr.msra.gmra.mxu0 %v1691_v26 }
 0x717   :  { %v2057_v28 = vpop.f32.mrf.mxu0 }
 0x718   :  { %v1787_v29 = vadd.f32 %v2057_v28, %v1841_v27 }
 0x719   :  { %v1781_v30 = vpop.f32.mrf.mxu0 }
 0x71a   :  { %v1791_v20 = vadd.f32 %v1787_v29, %v1597_v16  ;;  %v1782_v31 = vadd.f32 %v1841_v27, %v1781_v30 }
 0x71c   :  { %1793 = vst.msk [vmem:[#allocation3 + $0x8] sm:$0xff] %vm33_vm0, %v1791_v20  ;;  %v1790_v8 = vadd.f32 %v1782_v31, %v1596_v15 }
 0x71e   :  { %1792 = vst.msk [vmem:[#allocation3] sm:$0xff] %vm33_vm0, %v1790_v8 }
 0x71f   :  { %2119 = shalt.err (!%p2116_p4)
}
 0x720   :  { %s2147_s6 = smov 128  }
 0x721   :  { %1805 = dma.vmem_to_hbm [thread:$0]  %s1800_s25, 256, %s2469_s7, [#allocation4], %s2147_s6, %s2147_s6, %s2143_s22  }
 0x722   :  { %2128 = dma.done.wait [#allocation4], 256  }
 0x723   :  { %2129 = vsyncadd [#allocation4], 4294967040 }
 0x724   :  { %1809 = vsyncpa [#allocation4], 1 }

</bundles_post_ra>
